<compile_context>
chip_gen: v7x
topology: tpu7x:2x2x1
jax: 0.10.0
libtpu: 0.0.40
codegen_flags: <defaults>
</compile_context>

<pallas_src>
import functools

import jax
import jax.numpy as jnp
from jax.experimental import pallas as pl
from jax.experimental.pallas import tpu as pltpu

BN_EPS = 1e-5
_LANE = 128
_SUBLANE = 8


def _round_up(x, m):
    return ((x + m - 1) // m) * m


def _head_kernel(x_ref, w_ref, b_ref, o_ref, *, num_labels):
    # ReLU (BN already folded into w/b), then Linear on the MXU.
    # ReLU in f32 (v5e has no bf16 VALU); dot operands in the weight dtype
    # (native bf16xbf16->f32 MXU mode when params are bf16), f32 accumulation.
    # TODO(synk): training-mode dropout (pltpu.prng_random_bits mask) not emitted;
    # eval-mode dropout is identity, matching the PyTorch module in eval().
    w = w_ref[...]
    x = jnp.maximum(x_ref[...].astype(jnp.float32), 0.0).astype(w.dtype)
    y = jnp.dot(x, w, preferred_element_type=jnp.float32) + b_ref[...].astype(jnp.float32)
    # Narrow, lane-masked store: only the useful num_labels columns hit HBM.
    o_ref[...] = y[:, :num_labels].astype(o_ref.dtype)


def prepare_params(weight, bias, gamma=None, beta=None,
                   running_mean=None, running_var=None,
                   use_batch_norm=True, param_dtype=jnp.float32):
    """One-time parameter prep: fold BN into Linear, transpose, pad lanes to 128.

    weight: [L, H] (PyTorch nn.Linear layout), bias: [L].
    Returns (w_folded [H, L_pad] in param_dtype, b_folded [1, L_pad] f32, L).
    """
    L, H = weight.shape
    w_orig_t = jnp.transpose(weight).astype(jnp.float32)                        # [H, L]
    if use_batch_norm:
        s = (gamma * jax.lax.rsqrt(running_var + BN_EPS)).astype(jnp.float32)   # [H]
        w_t = w_orig_t * s[:, None]                                             # [H, L]
        b = bias.astype(jnp.float32) + (beta - running_mean * s).astype(jnp.float32) @ w_orig_t
    else:
        w_t = w_orig_t
        b = bias.astype(jnp.float32)

    # Lane-dense weight for the MXU: pad num_labels up to a multiple of 128.
    L_pad = _round_up(L, _LANE)
    w_pad = jnp.zeros((H, L_pad), jnp.float32).at[:, :L].set(w_t).astype(param_dtype)
    b_pad = jnp.zeros((1, L_pad), jnp.float32).at[:, :L].set(b)                 # bias stays f32
    return w_pad, b_pad, L


def _vmem_budget_bytes():
    """~Half of physical VMEM (queried); conservative 32 MiB fallback."""
    try:
        phys = int(pltpu.get_tpu_info().vmem_capacity_bytes)
    except Exception:
        phys = 64 * 1024 * 1024
    return phys, min(phys // 2, 96 * 1024 * 1024)


def _pick_batch_tile(B, H, L, L_pad, x_bytes, w_bytes, vmem_budget):
    """Largest batch tile s.t. double-buffered x/out tiles + (double-buffered)
    resident weight fit the budget; big tiles amortize the ~0.35us/step cost."""
    fixed = 2 * (H * L_pad + L_pad) * w_bytes            # weight+bias, counted twice (double-buffered)
    per_row = 2 * (H * x_bytes + L * 4)                  # double-buffered x row + narrow f32 out row
    avail = max(vmem_budget - fixed, per_row * _SUBLANE)  # graceful floor if weight alone is huge
    tb = max(_SUBLANE, avail // per_row)
    tb = min(tb, 8192)                                   # stream multiple MB per step, stay VMEM-safe
    if B > 2 * _SUBLANE:
        # Keep >=2 grid steps so v7x can shard the batch across its 2 TensorCores.
        tb = min(tb, _round_up((B + 1) // 2, _SUBLANE))
    tb = max(_SUBLANE, (tb // _SUBLANE) * _SUBLANE)
    tb = min(tb, _round_up(B, _SUBLANE))
    return int(tb)


def classification_head_forward(features, w_folded, b_folded, num_labels, *, block_b=None):
    """features: [B, H]; w_folded/b_folded/num_labels from prepare_params. Returns [B, num_labels]."""
    B, H = features.shape
    L_pad = w_folded.shape[1]
    x_bytes = jnp.dtype(features.dtype).itemsize
    w_bytes = jnp.dtype(w_folded.dtype).itemsize

    phys_vmem, budget = _vmem_budget_bytes()
    TB = int(block_b) if block_b is not None else _pick_batch_tile(
        B, H, num_labels, L_pad, x_bytes, w_bytes, budget)
    grid = pl.cdiv(B, TB)   # ragged tail handled by Pallas (clipped writeback); no jnp.pad pass

    # Scoped-VMEM limit: actual need + headroom, never above 3/4 of physical.
    vmem_need = 2 * TB * H * x_bytes + 2 * TB * num_labels * 4 + 2 * (H * L_pad + L_pad) * w_bytes
    vmem_limit = int(min(phys_vmem * 3 // 4, max(vmem_need + (4 << 20), 32 << 20)))

    out = pl.pallas_call(
        functools.partial(_head_kernel, num_labels=num_labels),
        out_shape=jax.ShapeDtypeStruct((B, num_labels), features.dtype),
        grid_spec=pltpu.PrefetchScalarGridSpec(
            num_scalar_prefetch=0,
            grid=(grid,),
            in_specs=[
                pl.BlockSpec((TB, H), lambda i: (i, 0)),        # streamed, double-buffered
                pl.BlockSpec((H, L_pad), lambda i: (0, 0)),     # weight resident across grid
                pl.BlockSpec((1, L_pad), lambda i: (0, 0)),     # bias resident across grid
            ],
            out_specs=pl.BlockSpec((TB, num_labels), lambda i: (i, 0)),  # narrow HBM writeback
        ),
        compiler_params=pltpu.CompilerParams(
            dimension_semantics=("parallel",),                  # batch tiles shard over v7x's 2 TCs
            vmem_limit_bytes=vmem_limit,
        ),
    )(features, w_folded, b_folded)
    return out


if __name__ == "__main__":
    # Config: hidden_size=32, num_labels=4, use_relu=use_batch_norm=use_dropout=True (eval mode).
    B, H, L = 8, 32, 4
    key = jax.random.PRNGKey(0)
    k_x, k_g, k_b, k_m, k_v, k_w, k_bi = jax.random.split(key, 7)

    features = jax.random.normal(k_x, (B, H), dtype=jnp.float32)
    gamma = 1.0 + 0.1 * jax.random.normal(k_g, (H,), dtype=jnp.float32)
    beta = 0.1 * jax.random.normal(k_b, (H,), dtype=jnp.float32)
    running_mean = 0.1 * jax.random.normal(k_m, (H,), dtype=jnp.float32)
    running_var = jnp.abs(jax.random.normal(k_v, (H,), dtype=jnp.float32)) + 0.5
    weight = jax.random.normal(k_w, (L, H), dtype=jnp.float32) / jnp.sqrt(H)
    bias = 0.01 * jax.random.normal(k_bi, (L,), dtype=jnp.float32)

    # One-time parameter preparation (BN fold + transpose + lane padding).
    # (param_dtype=jnp.bfloat16 is supported for large-H configs; f32 here for exact check.)
    w_folded, b_folded, num_labels = prepare_params(
        weight, bias, gamma, beta, running_mean, running_var,
        use_batch_norm=True, param_dtype=jnp.float32)
    w_folded, b_folded = jax.block_until_ready((w_folded, b_folded))

    out = classification_head_forward(features, w_folded, b_folded, num_labels)
    out = jax.block_until_ready(out)

    # Pure-JAX reference (un-folded BN math), eval mode.
    xr = jnp.maximum(features, 0.0)
    xr = (xr - running_mean) * jax.lax.rsqrt(running_var + BN_EPS) * gamma + beta
    ref = xr @ weight.T + bias

    assert out.shape == (B, L), f"bad output shape {out.shape}"
    assert jnp.allclose(out, ref, atol=1e-5, rtol=1e-5), "mismatch vs reference"

    print("KERNEL_OK")
</pallas_src>

<mosaic_0001>
module attributes {stable_mosaic.version = 11 : i64} {
  func.func @_head_kernel(%arg0: i32, %arg1: memref<8x32xf32, #tpu.memory_space<vmem>>, %arg2: memref<32x128xf32, #tpu.memory_space<vmem>>, %arg3: memref<1x128xf32, #tpu.memory_space<vmem>>, %arg4: memref<8x4xf32, #tpu.memory_space<vmem>>) attributes {dimension_semantics = [#tpu.dimension_semantics<parallel>], iteration_bounds = array<i64: 1>, scalar_prefetch = 0 : i64, scratch_operands = 0 : i64, tpu.core_type = #tpu.core_type<tc>, window_params = [{transform_indices = @transform_0, window_bounds = array<i64: 8, 32>}, {pipeline_mode = #tpu.pipeline_mode<synchronous>, transform_indices = @transform_1, window_bounds = array<i64: 32, 128>}, {pipeline_mode = #tpu.pipeline_mode<synchronous>, transform_indices = @transform_2, window_bounds = array<i64: 1, 128>}, {transform_indices = @transform_3, window_bounds = array<i64: 8, 4>}]} {
    %c0 = arith.constant 0 : index
    %c0_0 = arith.constant 0 : index
    %0 = vector.load %arg2[%c0, %c0_0] : memref<32x128xf32, #tpu.memory_space<vmem>>, vector<32x128xf32>
    %c0_1 = arith.constant 0 : index
    %c0_2 = arith.constant 0 : index
    %1 = vector.load %arg1[%c0_1, %c0_2] : memref<8x32xf32, #tpu.memory_space<vmem>>, vector<8x32xf32>
    %cst = arith.constant 0.000000e+00 : f32
    %2 = vector.broadcast %cst : f32 to vector<8x32xf32>
    %3 = arith.maximumf %1, %2 : vector<8x32xf32>
    %cst_3 = arith.constant dense<0.000000e+00> : vector<8x128xf32>
    %4 = tpu.matmul %3, %0, %cst_3 {dimension_numbers = #tpu.dot_dimension_numbers<[1], [0], [0], [1], [0, 0, 1, 1], [], []>} : vector<8x32xf32>, vector<32x128xf32>, vector<8x128xf32> -> vector<8x128xf32>
    %c0_4 = arith.constant 0 : index
    %c0_5 = arith.constant 0 : index
    %5 = vector.load %arg3[%c0_4, %c0_5] : memref<1x128xf32, #tpu.memory_space<vmem>>, vector<1x128xf32>
    %6 = vector.broadcast %5 : vector<1x128xf32> to vector<8x128xf32>
    %7 = arith.addf %4, %6 : vector<8x128xf32>
    %8 = vector.extract_strided_slice %7 {offsets = [0, 0], sizes = [8, 4], strides = [1, 1]} : vector<8x128xf32> to vector<8x4xf32>
    %c0_6 = arith.constant 0 : index
    %c0_7 = arith.constant 0 : index
    %9 = vector.load %arg4[%c0_6, %c0_7] : memref<8x4xf32, #tpu.memory_space<vmem>>, vector<8x4xf32>
    tpu.vector_store %arg4[%c0_6, %c0_7], %8 {strides = array<i32>} : memref<8x4xf32, #tpu.memory_space<vmem>>, vector<8x4xf32>,
    return
  }
  func.func @transform_0(%arg0: i32) -> (i32, i32) {
    %c0_i32 = arith.constant 0 : i32
    %c0_i32_0 = arith.constant 0 : i32
    return %arg0, %c0_i32 : i32, i32
  }
  func.func @transform_1(%arg0: i32) -> (i32, i32) {
    %c0_i32 = arith.constant 0 : i32
    %c0_i32_0 = arith.constant 0 : i32
    %c0_i32_1 = arith.constant 0 : i32
    return %c0_i32, %c0_i32_0 : i32, i32
  }
  func.func @transform_2(%arg0: i32) -> (i32, i32) {
    %c0_i32 = arith.constant 0 : i32
    %c0_i32_0 = arith.constant 0 : i32
    %c0_i32_1 = arith.constant 0 : i32
    return %c0_i32, %c0_i32_0 : i32, i32
  }
  func.func @transform_3(%arg0: i32) -> (i32, i32) {
    %c0_i32 = arith.constant 0 : i32
    %c0_i32_0 = arith.constant 0 : i32
    return %arg0, %c0_i32 : i32, i32
  }
}

</mosaic_0001>

<bundles_post_ra>
// kernel: tpu_custom_call.1
= control target key start
LH: loop header
LB: loop body
LE: loop exit
PB: predicated region body
PF: predicated region fallthrough
CT: control target
= control target key end

     0   :  { %8 = vsyncpa [#allocation3], 0  ;;  %s278_s0 = inlined_call_operand.hbm [shape: f32[8,32], index: 0, kind: input, shape index: {}]   ;;  %s279_s1 = inlined_call_operand.hbm [shape: f32[32,128], index: 1, kind: input, shape index: {}]   ;;  %s280_s2 = inlined_call_operand.vmem [shape: f32[1,128], index: 2, kind: input, shape index: {}]   ;;  %s281_s3 = inlined_call_operand.vmem [shape: f32[8,4], index: 3, kind: output, shape index: {}]  }
   0x1   :  { %9 = vsyncpa [#allocation5], 0  ;;  %s214_s12 = smov [#allocation2]   ;;  %s215_s14 = smov [#allocation4]  }
   0x2   :  { %s16_s13 = sshll.u32 %s214_s12, 4  ;;  %s25_s15 = sshll.u32 %s215_s14, 4  ;;  %s17_s13 = int_to_ptr.vmem [resolvable:$true] %s16_s13  ;;  %s241_s15 = int_to_ptr.vmem [resolvable:$true] %s25_s15 }
   0x3   :  { %s166_s18 = scalar_lea.hbm %s278_s0, 128 }
   0x4   :  { %p167_p0 = scmp.ne.s32.totalorder %s278_s0, %s166_s18  ;;  %p170_p1 = scmp.lt.u32.totalorder %s166_s18, %s278_s0 }
   0x6   :  { %p172_p2 = pnand %p170_p1, %p167_p0 }
   0x8   :  { %175 = shalt.err (!%p172_p2)
}
   0x9   :  { %s176_s23 = scalar_lea.vmem %s17_s13, 128  ;;  %p181_p4 = scmp.lt.s32.totalorder %s17_s13, %s17_s13 }
   0xa   :  { %p177_p3 = scmp.ne.s32.totalorder %s17_s13, %s176_s23  ;;  %p182_p5 = scmp.lt.s32.totalorder %s176_s23, %s176_s23 }
   0xc   :  { %p183_p6 = por %p182_p5, %p181_p4 }
   0xe   :  { %p184_p7 = pnand %p183_p6, %p177_p3 }
  0x10   :  { %187 = shalt.err (!%p184_p7)
}
  0x11   :  { %19 = dma.hbm_to_vmem [thread:$0]  %s278_s0, 128, %s17_s13, [#allocation3]  }
  0x12   :  { %s188_s28 = scalar_lea.hbm %s279_s1, 512 }
  0x13   :  { %p189_p8 = scmp.ne.s32.totalorder %s279_s1, %s188_s28  ;;  %p192_p9 = scmp.lt.u32.totalorder %s188_s28, %s279_s1 }
  0x15   :  { %p194_p10 = pnand %p192_p9, %p189_p8 }
  0x17   :  { %197 = shalt.err (!%p194_p10)
}
  0x18   :  { %s198_s6 = scalar_lea.vmem %s241_s15, 512  ;;  %p203_p12 = scmp.lt.s32.totalorder %s241_s15, %s241_s15 }
  0x19   :  { %p199_p11 = scmp.ne.s32.totalorder %s241_s15, %s198_s6  ;;  %p204_p13 = scmp.lt.s32.totalorder %s198_s6, %s198_s6 }
  0x1b   :  { %p205_p0 = por %p204_p13, %p203_p12 }
  0x1d   :  { %p206_p1 = pnand %p205_p0, %p199_p11 }
  0x1f   :  { %209 = shalt.err (!%p206_p1)
}
  0x20   :  { %s216_s0 = smov 128   ;;  %s217_s7 = smov 8  }
  0x21   :  { %31 = dma.hbm_to_vmem [thread:$0]  %s279_s1, 512, %s241_s15, [#allocation5], %s216_s0, %s216_s0, %s217_s7  }
  0x22   :  { %210 = dma.done.wait [#allocation3], 128  }
  0x23   :  { %211 = vsyncadd [#allocation3], 4294967168 }
  0x24   :  { %212 = dma.done.wait [#allocation5], 512  }
  0x25   :  { %213 = vsyncadd [#allocation5], 4294966784  ;;  %v218_v0 = vmov 0.0|0.0   ;;  %vm219_vm0 = vmmov 0   ;;  %v220_v1 = vmov 0.0   ;;  %v40_v2 = vld [vmem:[#allocation4] sm:$0xff] }
  0x26   :  { %153 = vmatprep.subr.bf16.mxu0 %v218_v0  ;;  %150 = vmatprep.mubr.msk.f32.mxu0 %vm219_vm0, %v220_v1  ;;  %v41_v3 = vld [vmem:[#allocation4 + $0x8] sm:$0xff]  ;;  %v42_v4 = vld [vmem:[#allocation4 + $0x10] sm:$0xff]  ;;  %v43_v6 = vld [vmem:[#allocation4 + $0x18] sm:$0xff]  ;;  %vm53_vm1 = vcmask 261120   ;;  %vm127_vm2 = vcmask 31744  }
  0x27   :  { %v154_v5 = vpack.c.bf16 %v41_v3, %v40_v2  ;;  %v157_v7 = vpack.c.bf16 %v43_v6, %v42_v4  ;;  %v44_v8 = vld [vmem:[#allocation2] sm:$0xff]  ;;  %v135_v10 = vld [vmem:[%s280_s2] ss:$0 sm:$0xff] }
  0x28   :  { %v45_v9 = vmax.f32 %v44_v8, 0.0 }
  0x29   :  { %155 = vmatpush3.bf16.msra.mxu0 %v154_v5 }
  0x2a   :  { %156 = vmatprep.subr.bf16.mxu0 %v218_v0 }
  0x2d   :  { %158 = vmatpush3.bf16.msra.mxu0 %v157_v7 }
  0x30   :  { %151 = vmatmul.mubr.msk.f32.vlgmr.msra.gmra.mrb[0].mxu0 %vm53_vm1, %v45_v9 }
 0x103   :  { %v123_v11 = vpop.f32.mrb[0].mxu0 }
 0x104   :  { %v124_v12 = vadd.f32 %v135_v10, %v123_v11  ;;  %v152_v13 = vpop.f32.mrb[1].mxu0 }
 0x106   :  { %128 = vst.msk [vmem:[%s281_s3] sm:$0xff] %vm127_vm2, %v124_v12 }
 0x107   :  { %133 = vsyncpa [#allocation3], 1 }
 0x108   :  { %134 = vsyncpa [#allocation5], 1 }

</bundles_post_ra>
